<compile_context>
chip_gen: v7x
topology: tpu7x:2x2x1
jax: 0.10.0
libtpu: 0.0.40
codegen_flags: <defaults>
</compile_context>

<pallas_src>
import functools

import jax
import jax.numpy as jnp
from jax.experimental import pallas as pl
from jax.experimental.pallas import tpu as pltpu


# Per-step budget for (x block + out block) bytes streamed through VMEM.
_BLOCK_BUDGET_BYTES = 16 * 1024 * 1024
# Try to give the grid at least this many steps (v7x dual-TC + pipeline overlap),
# but never at the cost of shrinking blocks below _MIN_SPLIT_BLOCK_BYTES.
_MIN_PROGRAMS = 4
_MIN_SPLIT_BLOCK_BYTES = 2 * 1024 * 1024
_VMEM_CAP_BYTES = 48 * 1024 * 1024


def _sublane_multiple(dtype):
    # f32 -> 8, bf16/f16 -> 16, int8/fp8 -> 32 (packed rows per sublane).
    itemsize = jnp.dtype(dtype).itemsize
    return 8 * max(1, 4 // max(itemsize, 1))


def _pick_tile(dim, row_bytes, *, multiple, target_bytes=_BLOCK_BUDGET_BYTES,
               min_programs=1):
    """Largest tile along `dim` (multiple of `multiple`, or the full dim) whose
    rows fit `target_bytes`; optionally capped so the grid gets >= min_programs
    steps, but only when blocks stay comfortably large."""
    dim = int(dim)
    row_bytes = max(int(row_bytes), 1)
    t = min(dim, max(1, target_bytes // row_bytes))
    if min_programs > 1:
        cap = -(-dim // min_programs)  # cdiv
        if cap * row_bytes >= _MIN_SPLIT_BLOCK_BYTES:
            t = min(t, cap)
    if t < dim:
        t = max(multiple, t - t % multiple)
        t = min(t, dim)
    return int(t)


def _vmem_limit_bytes(total_block_bytes):
    # Double-buffered in/out blocks + headroom, capped under v7x's 64 MiB VMEM.
    return int(min(_VMEM_CAP_BYTES,
                   max(4 * 1024 * 1024, 2 * int(total_block_bytes) + (2 << 20))))


def _add_bcast3d_kernel(x_ref, pe_ref, o_ref):
    # (ts, tb, D) + (ts, 1, D): broadcast over batch; promotes if dtypes differ.
    o_ref[...] = (x_ref[...] + pe_ref[...]).astype(o_ref.dtype)


def _add_tiled_pe_kernel(reps, x_ref, pe_ref, o_ref):
    # x block (ts, B*D); pe block (ts, D) is replicated across the batch along
    # the lane axis in-register (no tiled pe array in HBM).
    pe = pe_ref[...]
    if reps > 1:
        pe = jnp.tile(pe, (1, reps))
    o_ref[...] = (x_ref[...] + pe).astype(o_ref.dtype)


def positional_encoding(x, lpe_weight, indices=None, *, donate_x=False):
    """x: (S, B, D) seq-first; lpe_weight: (max_len + 1, D); indices: optional (S,) int.

    Eval-mode forward of PositionalEncoding: x + lpe(indices), broadcast over batch.
    """
    S, B, D = x.shape
    V, Dw = lpe_weight.shape
    assert Dw == D, "d_model mismatch between x and embedding table"

    if indices is None:
        # self.indices[:S, :] == arange(S)[:, None] + 1 ; dropout(eval) == identity.
        assert S + 1 <= V, "sequence length exceeds max_len of the embedding table"
        indices = jnp.arange(S, dtype=jnp.int32) + 1
    else:
        indices = jnp.asarray(indices).reshape(-1).astype(jnp.int32)
        assert indices.shape[0] == S, "indices must have one entry per position"

    # PyTorch-style dtype promotion (e.g. bf16 x + f32 table -> f32 output).
    out_dtype = jnp.result_type(x.dtype, lpe_weight.dtype)

    # Wrapper-side gather + cast: the kernel never sees the (V, D) table.
    pe = lpe_weight[indices].astype(out_dtype)  # (S, D)

    x_isz = jnp.dtype(x.dtype).itemsize
    o_isz = jnp.dtype(out_dtype).itemsize
    per_elem = x_isz + o_isz                      # x block + out block bytes/element
    sub_mult = max(_sublane_multiple(x.dtype), _sublane_multiple(out_dtype))

    # Optional x -> out aliasing (only valid when dtypes match).
    io_alias = {0: 0} if (donate_x and out_dtype == jnp.dtype(x.dtype)) else {}

    if D % 128 == 0:
        # Lane-dense already: keep (S, B, D); pe is a thin (ts, 1, D) block
        # broadcast over batch inside the kernel (no extra pe HBM traffic).
        row3 = B * D * per_elem                   # bytes of one (1, B, D) x+out row
        if row3 <= _BLOCK_BUDGET_BYTES:
            tb = B                                # full batch: one contiguous HBM run
            ts = _pick_tile(S, row3, multiple=1, min_programs=_MIN_PROGRAMS)
        else:
            ts = 1                                # a single row exceeds the budget
            tb = _pick_tile(B, D * per_elem, multiple=sub_mult)
        blk_total = ts * tb * D * per_elem + ts * D * o_isz
        out = pl.pallas_call(
            _add_bcast3d_kernel,
            out_shape=jax.ShapeDtypeStruct((S, B, D), out_dtype),
            grid=(pl.cdiv(S, ts), pl.cdiv(B, tb)),
            in_specs=[
                pl.BlockSpec((ts, tb, D), lambda i, j: (i, j, 0)),
                pl.BlockSpec((ts, 1, D), lambda i, j: (i, 0, 0)),
            ],
            out_specs=pl.BlockSpec((ts, tb, D), lambda i, j: (i, j, 0)),
            input_output_aliases=io_alias,
            compiler_params=pltpu.CompilerParams(
                dimension_semantics=("parallel", "parallel"),
                vmem_limit_bytes=_vmem_limit_bytes(blk_total),
            ),
        )(x, pe[:, None, :])
        return out

    # D not a multiple of 128: collapse (B, D) -> W = B*D so the stores are as
    # lane-dense as the data allows. pe stays (S, D); the batch replication
    # happens in-register inside the kernel.
    W = B * D
    x2 = x.reshape(S, W)                          # contiguous reshape: free in XLA
    ts = _pick_tile(S, W * per_elem, multiple=sub_mult, min_programs=_MIN_PROGRAMS)
    blk_total = ts * W * per_elem + ts * D * o_isz
    out2 = pl.pallas_call(
        functools.partial(_add_tiled_pe_kernel, B),
        out_shape=jax.ShapeDtypeStruct((S, W), out_dtype),
        grid=(pl.cdiv(S, ts),),
        in_specs=[
            pl.BlockSpec((ts, W), lambda i: (i, 0)),
            pl.BlockSpec((ts, D), lambda i: (i, 0)),
        ],
        out_specs=pl.BlockSpec((ts, W), lambda i: (i, 0)),
        input_output_aliases=io_alias,
        compiler_params=pltpu.CompilerParams(
            dimension_semantics=("parallel",),
            vmem_limit_bytes=_vmem_limit_bytes(blk_total),
        ),
    )(x2, pe)
    return out2.reshape(S, B, D)


if __name__ == "__main__":
    # Small shapes consistent with the module's forward pass (seq-first x).
    S, B, D = 8, 2, 32          # seq=8, batch=2, d_model=32
    MAX_LEN = 16                # embedding table has MAX_LEN + 1 rows

    key = jax.random.PRNGKey(0)
    kx, kw = jax.random.split(key)

    x = jax.random.normal(kx, (S, B, D), dtype=jnp.float32)
    # init_weights(): uniform(-0.1, 0.1), deterministic.
    lpe_weight = jax.random.uniform(
        kw, (MAX_LEN + 1, D), minval=-0.1, maxval=0.1, dtype=jnp.float32
    )

    out = jax.block_until_ready(positional_encoding(x, lpe_weight))

    idx_ref = jnp.arange(S, dtype=jnp.int32) + 1
    expected = x + lpe_weight[idx_ref][:, None, :]
    assert out.shape == (S, B, D) and out.dtype == x.dtype
    assert jnp.allclose(out, expected, atol=1e-6, rtol=1e-6)

    # Lane-dense-D path (D % 128 == 0) at a small shape.
    S2, B2, D2 = 24, 4, 128
    kx2, kw2 = jax.random.split(jax.random.PRNGKey(0))
    x2 = jax.random.normal(kx2, (S2, B2, D2), dtype=jnp.float32)
    w2 = jax.random.uniform(
        kw2, (S2 + 1, D2), minval=-0.1, maxval=0.1, dtype=jnp.float32
    )
    out2 = jax.block_until_ready(positional_encoding(x2, w2))
    exp2 = x2 + w2[jnp.arange(S2, dtype=jnp.int32) + 1][:, None, :]
    assert jnp.allclose(out2, exp2, atol=1e-6, rtol=1e-6)

    # Mixed dtypes promote like PyTorch: bf16 x + f32 table -> f32 output.
    x3 = x.astype(jnp.bfloat16)
    out3 = jax.block_until_ready(positional_encoding(x3, lpe_weight))
    exp3 = x3.astype(jnp.float32) + lpe_weight[idx_ref][:, None, :]
    assert out3.dtype == jnp.float32
    assert jnp.allclose(out3, exp3, atol=1e-6, rtol=1e-6)

    print("KERNEL_OK")
</pallas_src>

<mosaic_0001>
module attributes {stable_mosaic.version = 11 : i64} {
  func.func @_add_tiled_pe_kernel(%arg0: i32, %arg1: memref<8x64xf32, #tpu.memory_space<vmem>>, %arg2: memref<8x32xf32, #tpu.memory_space<vmem>>, %arg3: memref<8x64xf32, #tpu.memory_space<vmem>>) attributes {dimension_semantics = [#tpu.dimension_semantics<parallel>], iteration_bounds = array<i64: 1>, scalar_prefetch = 0 : i64, scratch_operands = 0 : i64, tpu.core_type = #tpu.core_type<tc>, window_params = [{transform_indices = @transform_0, window_bounds = array<i64: 8, 64>}, {transform_indices = @transform_1, window_bounds = array<i64: 8, 32>}, {transform_indices = @transform_2, window_bounds = array<i64: 8, 64>}]} {
    %c0 = arith.constant 0 : index
    %c0_0 = arith.constant 0 : index
    %0 = vector.load %arg2[%c0, %c0_0] : memref<8x32xf32, #tpu.memory_space<vmem>>, vector<8x32xf32>
    %1 = tpu.concatenate %0, %0 in 1 : vector<8x32xf32>, vector<8x32xf32> -> vector<8x64xf32>
    %c0_1 = arith.constant 0 : index
    %c0_2 = arith.constant 0 : index
    %2 = vector.load %arg1[%c0_1, %c0_2] : memref<8x64xf32, #tpu.memory_space<vmem>>, vector<8x64xf32>
    %3 = arith.addf %2, %1 : vector<8x64xf32>
    %c0_3 = arith.constant 0 : index
    %c0_4 = arith.constant 0 : index
    %4 = vector.load %arg3[%c0_3, %c0_4] : memref<8x64xf32, #tpu.memory_space<vmem>>, vector<8x64xf32>
    tpu.vector_store %arg3[%c0_3, %c0_4], %3 {strides = array<i32>} : memref<8x64xf32, #tpu.memory_space<vmem>>, vector<8x64xf32>,
    return
  }
  func.func @transform_0(%arg0: i32) -> (i32, i32) {
    %c0_i32 = arith.constant 0 : i32
    %c0_i32_0 = arith.constant 0 : i32
    return %arg0, %c0_i32 : i32, i32
  }
  func.func @transform_1(%arg0: i32) -> (i32, i32) {
    %c0_i32 = arith.constant 0 : i32
    %c0_i32_0 = arith.constant 0 : i32
    return %arg0, %c0_i32 : i32, i32
  }
  func.func @transform_2(%arg0: i32) -> (i32, i32) {
    %c0_i32 = arith.constant 0 : i32
    %c0_i32_0 = arith.constant 0 : i32
    return %arg0, %c0_i32 : i32, i32
  }
}

</mosaic_0001>

<bundles_post_ra>
// kernel: tpu_custom_call.1
= control target key start
LH: loop header
LB: loop body
LE: loop exit
PB: predicated region body
PF: predicated region fallthrough
CT: control target
= control target key end

     0   :  { %7 = vsyncpa [#allocation3], 0  ;;  %s194_s0 = inlined_call_operand.hbm [shape: f32[8,64], index: 0, kind: input, shape index: {}]   ;;  %s195_s1 = inlined_call_operand.hbm [shape: f32[8,32], index: 1, kind: input, shape index: {}]   ;;  %s196_s2 = inlined_call_operand.hbm [shape: f32[8,64], index: 2, kind: output, shape index: {}]  }
   0x1   :  { %8 = vsyncpa [#allocation6], 0 }
   0x2   :  { %9 = vsyncpa [#allocation4], 0  ;;  %s139_s9 = smov [#allocation2]   ;;  %s140_s11 = smov [#allocation5]  }
   0x3   :  { %s16_s10 = sshll.u32 %s139_s9, 4  ;;  %s26_s12 = sshll.u32 %s140_s11, 4  ;;  %s17_s10 = int_to_ptr.vmem [resolvable:$true] %s16_s10  ;;  %s27_s12 = int_to_ptr.vmem [resolvable:$true] %s26_s12 }
   0x4   :  { %s67_s15 = scalar_lea.hbm %s194_s0, 128 }
   0x5   :  { %p68_p0 = scmp.ne.s32.totalorder %s194_s0, %s67_s15  ;;  %p71_p1 = scmp.lt.u32.totalorder %s67_s15, %s194_s0 }
   0x7   :  { %p73_p2 = pnand %p71_p1, %p68_p0 }
   0x9   :  { %76 = shalt.err (!%p73_p2)
}
   0xa   :  { %s77_s20 = scalar_lea.vmem %s17_s10, 128  ;;  %p82_p4 = scmp.lt.s32.totalorder %s17_s10, %s17_s10 }
   0xb   :  { %p78_p3 = scmp.ne.s32.totalorder %s17_s10, %s77_s20  ;;  %p83_p5 = scmp.lt.s32.totalorder %s77_s20, %s77_s20 }
   0xd   :  { %p84_p6 = por %p83_p5, %p82_p4 }
   0xf   :  { %p85_p7 = pnand %p84_p6, %p78_p3 }
  0x11   :  { %88 = shalt.err (!%p85_p7)
}
  0x12   :  { %19 = dma.hbm_to_vmem [thread:$0]  %s194_s0, 128, %s17_s10, [#allocation3]  }
  0x13   :  { %s89_s25 = scalar_lea.hbm %s195_s1, 128 }
  0x14   :  { %p90_p8 = scmp.ne.s32.totalorder %s195_s1, %s89_s25  ;;  %p93_p9 = scmp.lt.u32.totalorder %s89_s25, %s195_s1 }
  0x16   :  { %p95_p10 = pnand %p93_p9, %p90_p8 }
  0x18   :  { %98 = shalt.err (!%p95_p10)
}
  0x19   :  { %s99_s30 = scalar_lea.vmem %s27_s12, 128  ;;  %p104_p12 = scmp.lt.s32.totalorder %s27_s12, %s27_s12 }
  0x1a   :  { %p100_p11 = scmp.ne.s32.totalorder %s27_s12, %s99_s30  ;;  %p105_p13 = scmp.lt.s32.totalorder %s99_s30, %s99_s30 }
  0x1c   :  { %p106_p0 = por %p105_p13, %p104_p12 }
  0x1e   :  { %p107_p1 = pnand %p106_p0, %p100_p11 }
  0x20   :  { %110 = shalt.err (!%p107_p1)
}
  0x21   :  { %29 = dma.hbm_to_vmem [thread:$0]  %s195_s1, 128, %s27_s12, [#allocation6]  }
  0x22   :  { %133 = dma.done.wait [#allocation3], 128  }
  0x23   :  { %134 = vsyncadd [#allocation3], 4294967168 }
  0x24   :  { %135 = dma.done.wait [#allocation6], 128  }
  0x25   :  { %136 = vsyncadd [#allocation6], 4294967168  ;;  %v36_v0 = vld [vmem:[#allocation5] sm:$0xff]  ;;  %s141_s4 = smov 32   ;;  %vm41_vm0 = vcmask 261120   ;;  %v43_v1 = vld [vmem:[#allocation2] sm:$0xff] }
  0x26   :  { %38 = vrot.lane.b32.xlu0 %v36_v0, %s141_s4  ;;  %s142_s5 = smov [#allocation7]   ;;  %vm45_vm1 = vcmask 523264  }
  0x27   :  { %s53_s6 = sshll.u32 %s142_s5, 4  ;;  %s54_s6 = int_to_ptr.vmem [resolvable:$true] %s53_s6 }
  0x28   :  { %s111_s7 = scalar_lea.vmem %s54_s6, 128  ;;  %p116_p3 = scmp.lt.s32.totalorder %s54_s6, %s54_s6 }
  0x29   :  { %p112_p2 = scmp.ne.s32.totalorder %s54_s6, %s111_s7  ;;  %p117_p4 = scmp.lt.s32.totalorder %s111_s7, %s111_s7 }
  0x2b   :  { %p118_p5 = por %p117_p4, %p116_p3 }
  0x2d   :  { %p119_p6 = pnand %p118_p5, %p112_p2 }
  0x98   :  { %v39_v2 = vpop.permute.xlu0 %38 }
  0x99   :  { %v42_v3 = vsel %vm41_vm0, %v36_v0, %v39_v2 }
  0x9a   :  { %v44_v4 = vadd.f32 %v43_v1, %v42_v3 }
  0x9c   :  { %46 = vst.msk [vmem:[#allocation7] sm:$0xff] %vm45_vm1, %v44_v4 }
  0x9d   :  { %122 = shalt.err (!%p119_p6)
}
  0x9e   :  { %s123_s9 = scalar_lea.hbm %s196_s2, 128 }
  0x9f   :  { %p124_p7 = scmp.ne.s32.totalorder %s196_s2, %s123_s9  ;;  %p127_p8 = scmp.lt.u32.totalorder %s123_s9, %s196_s2 }
  0xa1   :  { %p129_p9 = pnand %p127_p8, %p124_p7 }
  0xa3   :  { %132 = shalt.err (!%p129_p9)
}
  0xa4   :  { %56 = dma.vmem_to_hbm [thread:$0]  %s54_s6, 128, %s196_s2, [#allocation4]  }
  0xa5   :  { %137 = dma.done.wait [#allocation4], 128  }
  0xa6   :  { %138 = vsyncadd [#allocation4], 4294967168 }
  0xa7   :  { %60 = vsyncpa [#allocation3], 1 }
  0xa8   :  { %61 = vsyncpa [#allocation6], 1 }
  0xa9   :  { %62 = vsyncpa [#allocation4], 1 }

</bundles_post_ra>
